<compile_context>
chip_gen: v7x
topology: tpu7x:2x2x1
jax: 0.10.0
libtpu: 0.0.40
codegen_flags: <defaults>
</compile_context>

<pallas_src>
import functools

import jax
import jax.numpy as jnp
from jax.experimental import pallas as pl
from jax.experimental.pallas import tpu as pltpu

NUM_RULES = 4
LANES = 128
# Minimum rows-of-128-lanes per block before we force a >=2-way grid split
# (keeps the ~0.35 us per-step overhead < ~10% of each step's DMA time).
_MIN_SPLIT_ROWS = 128


def _rule0(x):
    return jnp.tanh(x)


def _rule1(x):
    # sigmoid(x) == 0.5 * (tanh(0.5 * x) + 1): single EUP transcendental.
    return 0.5 * (jnp.tanh(0.5 * x) + 1.0)


def _rule2(x):
    # NOTE: sin is not an EUP primitive; it lowers to a VPU polynomial.  It is
    # hidden under the HBM roofline on v5e/v6e; on v7x audit the VALU slot if
    # the bundle dump shows it binding and swap in a cheaper approximation.
    return jnp.sin(x)


def _rule3(x):
    return x * x


_RULES = (_rule0, _rule1, _rule2, _rule3)


def _cdiv(a, b):
    return -(-a // b)


def _round_up(a, b):
    return _cdiv(a, b) * b


def hardrule_kernel(w_ref, s_ref, o_ref):
    # w_ref: SMEM, shape (NUM_RULES + 1,) f32
    # s_ref: VMEM, shape (NUM_RULES, tm, 128) f32  (batch on lanes)
    # o_ref: VMEM, shape (tm, 128) f32
    vals = [w_ref[i] * _RULES[i](s_ref[i]) for i in range(NUM_RULES)]

    # Pairwise min tree: 3 elementwise VALU ops, no concat / XLU reduce.
    while len(vals) > 1:
        nxt = [jnp.minimum(vals[j], vals[j + 1]) for j in range(0, len(vals) - 1, 2)]
        if len(vals) % 2:
            nxt.append(vals[-1])
        vals = nxt

    # Global output scale applied AFTER the min (correct for negative w[-1]).
    o_ref[...] = w_ref[NUM_RULES] * vals[0]


def hardrule_reference(s, w):
    """Pure-jnp reference (also the fused small-batch fast path)."""
    cols = jnp.stack(
        [w[i] * _RULES[i](s[:, i]) for i in range(NUM_RULES)], axis=1
    )  # [B, R]
    return w[-1] * jnp.min(cols, axis=1, keepdims=True)  # [B, 1]


def _choose_tiling(n_rows, block_rows):
    """Pick (tm, n_blocks) for n_rows rows of 128 lanes."""
    rows8 = _round_up(max(n_rows, 1), 8)  # (8,128)-aligned sublane dim
    want_blocks = _cdiv(rows8, block_rows)
    # v7x has 2 TensorCores: force >= 2 blocks once each block still has
    # >= _MIN_SPLIT_ROWS rows, so "parallel" grid sharding has work to split.
    if rows8 >= 2 * _MIN_SPLIT_ROWS:
        want_blocks = max(want_blocks, 2)
    tm = min(_round_up(_cdiv(rows8, want_blocks), 8), block_rows, rows8)
    n_blocks = _cdiv(rows8, tm)
    return tm, n_blocks


def _hardrule_pallas(s_cols, w, *, block_rows):
    """s_cols: [NUM_RULES, B] f32 (column-major input), w: [NUM_RULES+1] f32."""
    R, B = s_cols.shape
    n_rows = _cdiv(B, LANES)
    tm, n_blocks = _choose_tiling(n_rows, block_rows)
    rows_pad = n_blocks * tm
    b_pad = rows_pad * LANES

    # Single relayout copy (fused under the caller's jit): pad batch to a
    # whole number of aligned blocks and fold into lane-dense [R, rows, 128].
    s_t = jnp.pad(s_cols.astype(jnp.float32), ((0, 0), (0, b_pad - B)))
    s_t = s_t.reshape(R, rows_pad, LANES)

    # Per-block VMEM (double-buffered by Pallas):
    #   input  R * tm * 128 * 4 B  (= 4 MiB at tm=2048)
    #   output     tm * 128 * 4 B  (= 1 MiB at tm=2048)
    # ~10 MiB double-buffered: fits v5e's 16 MiB scoped default, and v6e/v7x's
    # 32 MiB, so no vmem_limit_bytes bump is needed.  If tm is ever swept past
    # 2048 on v5e, set vmem_limit_bytes explicitly.
    out = pl.pallas_call(
        hardrule_kernel,
        out_shape=jax.ShapeDtypeStruct((rows_pad, LANES), jnp.float32),
        grid=(n_blocks,),
        in_specs=[
            # Weights: 5 scalars, whole array in SMEM every step.
            pl.BlockSpec(memory_space=pltpu.MemorySpace.SMEM),
            # Input tile: all rules for a tm*128 batch slab.
            pl.BlockSpec((R, tm, LANES), lambda i: (0, i, 0)),
        ],
        out_specs=pl.BlockSpec((tm, LANES), lambda i: (i, 0)),
        compiler_params=pltpu.CompilerParams(
            dimension_semantics=("parallel",),
        ),
        cost_estimate=pl.CostEstimate(
            flops=12 * b_pad,
            transcendentals=3 * b_pad,
            bytes_accessed=(NUM_RULES + 1) * 4 * b_pad,
        ),
    )(w.astype(jnp.float32), s_t)

    # Padded rows hold garbage (e.g. sigmoid(0)=0.5 feeds the min); they MUST
    # be sliced off here.  Do not remove this [:B] slice or alias `out`.
    return out.reshape(-1)[:B].reshape(B, 1)


@functools.partial(jax.jit, static_argnames=("block_rows", "min_pallas_batch"))
def hardrule_forward(s, w, *, block_rows=2048, min_pallas_batch=16384):
    """s: [B, NUM_RULES] f32, w: [NUM_RULES + 1] f32 -> [B, 1] f32."""
    B, R = s.shape
    assert R == NUM_RULES and w.shape == (R + 1,)
    assert block_rows % 8 == 0

    if B < min_pallas_batch:
        # Small-batch fast path: XLA fuses this into a single tiny elementwise
        # pass; relayout + pallas_call launch overhead would dominate here.
        return hardrule_reference(s.astype(jnp.float32), w.astype(jnp.float32))

    return _hardrule_pallas(s.T, w, block_rows=block_rows)


if __name__ == "__main__":
    key = jax.random.PRNGKey(0)

    # nn.Parameter(torch.ones(len(rule_list) + 1)) -> deterministic ones init.
    w = jnp.ones((NUM_RULES + 1,), dtype=jnp.float32)

    # Case 1: module's natural small shape (batch=8, rules=4); force the
    # Pallas path so the kernel itself is exercised.
    B = 8
    s = jax.random.normal(key, (B, NUM_RULES), dtype=jnp.float32)
    out = jax.block_until_ready(hardrule_forward(s, w, min_pallas_batch=0))
    ref = hardrule_reference(s, w)
    assert out.shape == (B, 1) and out.dtype == jnp.float32
    assert jnp.allclose(out, ref, atol=1e-5, rtol=1e-5), (out, ref)

    # Case 2: batch crossing a 128-lane boundary (exercises padding + slice).
    B2 = 300
    s2 = jax.random.normal(jax.random.PRNGKey(1), (B2, NUM_RULES), dtype=jnp.float32)
    out2 = jax.block_until_ready(hardrule_forward(s2, w, min_pallas_batch=0))
    ref2 = hardrule_reference(s2, w)
    assert out2.shape == (B2, 1)
    assert jnp.allclose(out2, ref2, atol=1e-5, rtol=1e-5)

    # Case 3: small block_rows to exercise the multi-block grid + the
    # "parallel" batch axis (index_map over >= 2 blocks) at a small shape.
    B3 = 2000
    s3 = jax.random.normal(jax.random.PRNGKey(2), (B3, NUM_RULES), dtype=jnp.float32)
    out3 = jax.block_until_ready(
        hardrule_forward(s3, w, block_rows=8, min_pallas_batch=0)
    )
    ref3 = hardrule_reference(s3, w)
    assert out3.shape == (B3, 1)
    assert jnp.allclose(out3, ref3, atol=1e-5, rtol=1e-5)

    # Case 4: default small-batch fast path (pure-jnp, no Pallas launch).
    out4 = jax.block_until_ready(hardrule_forward(s, w))
    assert jnp.allclose(out4, ref, atol=1e-5, rtol=1e-5)

    print("KERNEL_OK")
</pallas_src>

<mosaic_0001>
module attributes {stable_mosaic.version = 11 : i64} {
  func.func @hardrule_kernel(%arg0: i32, %arg1: memref<5xf32, #tpu.memory_space<smem>>, %arg2: memref<4x8x128xf32, #tpu.memory_space<vmem>>, %arg3: memref<8x128xf32, #tpu.memory_space<vmem>>) attributes {dimension_semantics = [#tpu.dimension_semantics<parallel>], iteration_bounds = array<i64: 1>, scalar_prefetch = 0 : i64, scratch_operands = 0 : i64, tpu.core_type = #tpu.core_type<tc>, window_params = [{transform_indices = @transform_0, window_bounds = array<i64: 5>}, {transform_indices = @transform_1, window_bounds = array<i64: 4, 8, 128>}, {transform_indices = @transform_2, window_bounds = array<i64: 8, 128>}]} {
    %c0 = arith.constant 0 : index
    %0 = memref.load %arg1[%c0] : memref<5xf32, #tpu.memory_space<smem>>
    %c0_0 = arith.constant 0 : index
    %c0_1 = arith.constant 0 : index
    %c0_2 = arith.constant 0 : index
    %1 = vector.load %arg2[%c0_0, %c0_1, %c0_2] : memref<4x8x128xf32, #tpu.memory_space<vmem>>, vector<1x8x128xf32>
    %2 = vector.shape_cast %1 : vector<1x8x128xf32> to vector<8x128xf32>
    %3 = math.tanh %2 : vector<8x128xf32>
    %4 = vector.broadcast %0 : f32 to vector<8x128xf32>
    %5 = arith.mulf %4, %3 : vector<8x128xf32>
    %c1 = arith.constant 1 : index
    %6 = memref.load %arg1[%c1] : memref<5xf32, #tpu.memory_space<smem>>
    %c1_3 = arith.constant 1 : index
    %c0_4 = arith.constant 0 : index
    %c0_5 = arith.constant 0 : index
    %7 = vector.load %arg2[%c1_3, %c0_4, %c0_5] : memref<4x8x128xf32, #tpu.memory_space<vmem>>, vector<1x8x128xf32>
    %8 = vector.shape_cast %7 : vector<1x8x128xf32> to vector<8x128xf32>
    %cst = arith.constant 5.000000e-01 : f32
    %9 = vector.broadcast %cst : f32 to vector<8x128xf32>
    %10 = arith.mulf %9, %8 : vector<8x128xf32>
    %11 = math.tanh %10 : vector<8x128xf32>
    %cst_6 = arith.constant 1.000000e+00 : f32
    %12 = vector.broadcast %cst_6 : f32 to vector<8x128xf32>
    %13 = arith.addf %11, %12 : vector<8x128xf32>
    %cst_7 = arith.constant 5.000000e-01 : f32
    %14 = vector.broadcast %cst_7 : f32 to vector<8x128xf32>
    %15 = arith.mulf %14, %13 : vector<8x128xf32>
    %16 = vector.broadcast %6 : f32 to vector<8x128xf32>
    %17 = arith.mulf %16, %15 : vector<8x128xf32>
    %c2 = arith.constant 2 : index
    %18 = memref.load %arg1[%c2] : memref<5xf32, #tpu.memory_space<smem>>
    %c2_8 = arith.constant 2 : index
    %c0_9 = arith.constant 0 : index
    %c0_10 = arith.constant 0 : index
    %19 = vector.load %arg2[%c2_8, %c0_9, %c0_10] : memref<4x8x128xf32, #tpu.memory_space<vmem>>, vector<1x8x128xf32>
    %20 = vector.shape_cast %19 : vector<1x8x128xf32> to vector<8x128xf32>
    %21 = math.sin %20 : vector<8x128xf32>
    %22 = vector.broadcast %18 : f32 to vector<8x128xf32>
    %23 = arith.mulf %22, %21 : vector<8x128xf32>
    %c3 = arith.constant 3 : index
    %24 = memref.load %arg1[%c3] : memref<5xf32, #tpu.memory_space<smem>>
    %c3_11 = arith.constant 3 : index
    %c0_12 = arith.constant 0 : index
    %c0_13 = arith.constant 0 : index
    %25 = vector.load %arg2[%c3_11, %c0_12, %c0_13] : memref<4x8x128xf32, #tpu.memory_space<vmem>>, vector<1x8x128xf32>
    %26 = vector.shape_cast %25 : vector<1x8x128xf32> to vector<8x128xf32>
    %27 = arith.mulf %26, %26 : vector<8x128xf32>
    %28 = vector.broadcast %24 : f32 to vector<8x128xf32>
    %29 = arith.mulf %28, %27 : vector<8x128xf32>
    %30 = arith.minimumf %5, %17 : vector<8x128xf32>
    %31 = arith.minimumf %23, %29 : vector<8x128xf32>
    %32 = arith.minimumf %30, %31 : vector<8x128xf32>
    %c4 = arith.constant 4 : index
    %33 = memref.load %arg1[%c4] : memref<5xf32, #tpu.memory_space<smem>>
    %34 = vector.broadcast %33 : f32 to vector<8x128xf32>
    %35 = arith.mulf %34, %32 : vector<8x128xf32>
    %c0_14 = arith.constant 0 : index
    %c0_15 = arith.constant 0 : index
    %36 = vector.load %arg3[%c0_14, %c0_15] : memref<8x128xf32, #tpu.memory_space<vmem>>, vector<8x128xf32>
    tpu.vector_store %arg3[%c0_14, %c0_15], %35 {strides = array<i32>} : memref<8x128xf32, #tpu.memory_space<vmem>>, vector<8x128xf32>,
    return
  }
  func.func @transform_0(%arg0: i32) -> i32 {
    %c0_i32 = arith.constant 0 : i32
    %c0_i32_0 = arith.constant 0 : i32
    return %c0_i32 : i32
  }
  func.func @transform_1(%arg0: i32) -> (i32, i32, i32) {
    %c0_i32 = arith.constant 0 : i32
    %c0_i32_0 = arith.constant 0 : i32
    %c0_i32_1 = arith.constant 0 : i32
    return %c0_i32, %arg0, %c0_i32_0 : i32, i32, i32
  }
  func.func @transform_2(%arg0: i32) -> (i32, i32) {
    %c0_i32 = arith.constant 0 : i32
    %c0_i32_0 = arith.constant 0 : i32
    return %arg0, %c0_i32 : i32, i32
  }
}

</mosaic_0001>

<bundles_post_ra>
// kernel: hardrule_forward.1
= control target key start
LH: loop header
LB: loop body
LE: loop exit
PB: predicated region body
PF: predicated region fallthrough
CT: control target
= control target key end

     0   :  { %7 = vsyncpa [#allocation3], 0  ;;  %s270_s0 = inlined_call_operand.vmem [shape: f32[5], index: 0, kind: input, shape index: {}]   ;;  %s271_s1 = inlined_call_operand.vmem [shape: f32[4,8,128], index: 1, kind: input, shape index: {}]   ;;  %s272_s2 = inlined_call_operand.vmem [shape: f32[8,128], index: 2, kind: output, shape index: {}]  }
   0x1   :  { %s14_s11 = sshll.u32 %s270_s0, 4  ;;  %s15_s11 = int_to_ptr.vmem [resolvable:$true] %s14_s11 }
   0x2   :  { %s195_s12 = scalar_lea.vmem %s15_s11, 16  ;;  %p200_p1 = scmp.lt.s32.totalorder %s15_s11, %s15_s11 }
   0x3   :  { %p196_p0 = scmp.ne.s32.totalorder %s15_s11, %s195_s12  ;;  %p201_p2 = scmp.lt.s32.totalorder %s195_s12, %s195_s12 }
   0x5   :  { %p202_p3 = por %p201_p2, %p200_p1 }
   0x7   :  { %p203_p4 = pnand %p202_p3, %p196_p0 }
   0x9   :  { %206 = shalt.err (!%p203_p4)
}
   0xa   :  { %s209_s13 = smov [#allocation2]  }
   0xb   :  { %17 = dma.vmem_to_smem %s15_s11, 16, %s209_s13, [#allocation3]  }
   0xc   :  { %207 = dma.done.wait [#allocation3], 16  }
   0xd   :  { %208 = vsyncadd [#allocation3], 4294967280 }
   0xe   :  { %23 = sfence }
   0xf   :  { %v237_v0 = vld [vmem:[%s271_s1 + $0x10] sm:$0xff]  ;;  %v210_v11 = vmov 683565275   ;;  %v211_v13 = vmov 2475754826   ;;  %s24_s19 = sld [smem:[#allocation2]] }
  0x10   :  { %v44_v1 = vand.u32 2139095040, %v237_v0  ;;  %v41_v4 = vand.u32 2147483647, %v237_v0  ;;  %v212_v15 = vmov 2131351028   ;;  %vm43_vm7 = vcmp.lt.s32.totalorder %v237_v0, 0 }
  0x11   :  { %v213_v17 = vmov 2102212464   ;;  %v214_v19 = vmov 920167782   ;;  %v215_v27 = vmov 1326507024   ;;  %vm133_vm12 = vweird.f32 %v237_v0 }
  0x12   :  { %v45_v2 = vshrl.u32 %v44_v1, 23  ;;  %v48_v7 = vand.u32 8388607, %v41_v4  ;;  %vm42_vm8 = vcmp.le.f32.partialorder %v41_v4, 0.7853982  ;;  %s165_s20 = sld [smem:[#allocation2 + $0x1]] }
  0x13   :  { %s173_s21 = sld [smem:[#allocation2 + $0x3]]  ;;  %s167_s22 = sld [smem:[#allocation2 + $0x2]]  ;;  %v174_v4 = vld [vmem:[%s271_s1 + $0x18] sm:$0xff] }
  0x14   :  { %v169_v3 = vadd.s32 4294967169, %v45_v2  ;;  %v49_v21 = vor.u32 8388608, %v48_v7  ;;  %s175_s25 = sld [smem:[#allocation2 + $0x4]] }
  0x16   :  { %v51_v5 = vadd.s32 1, %v169_v3  ;;  %v89_v36 = vshll.u32 %v49_v21, 8 }
  0x18   :  { %vm52_vm0 = vcmp.gt.s32.totalorder %v51_v5, 0 }
  0x19   :  { %v53_v6 = vsel %vm52_vm0, %v51_v5, 0 }
  0x1a   :  { %v55_v8 = vand.u32 31, %v53_v6  ;;  %v54_v9 = vshrl.u32 %v53_v6, 5  ;;  %v166_v6 = vld [vmem:[%s271_s1 + $0x8] sm:$0xff] }
  0x1c   :  { %v56_v10 = vsub.s32 32, %v55_v8  ;;  %v58_v12 = vshll.u32 %v210_v11, %v55_v8  ;;  %v61_v14 = vshll.u32 %v211_v13, %v55_v8  ;;  %v64_v16 = vshll.u32 %v212_v15, %v55_v8 }
  0x1d   :  { %v67_v18 = vshll.u32 %v213_v17, %v55_v8  ;;  %v70_v20 = vshll.u32 %v214_v19, %v55_v8  ;;  %vm73_vm1 = vcmp.lt.s32.totalorder %v54_v9, 1  ;;  %vm75_vm2 = vcmp.lt.s32.totalorder %v54_v9, 3 }
  0x1e   :  { %v57_v22 = vshrl.u32 %v210_v11, %v56_v10  ;;  %v59_v23 = vshrl.u32 %v211_v13, %v56_v10  ;;  %v62_v24 = vshrl.u32 %v212_v15, %v56_v10  ;;  %v65_v25 = vshrl.u32 %v213_v17, %v56_v10  ;;  %v25_v17 = vld [vmem:[%s271_s1] sm:$0xff] }
  0x1f   :  { %v68_v26 = vshrl.u32 %v214_v19, %v56_v10  ;;  %v71_v28 = vshrl.u32 %v215_v27, %v56_v10  ;;  %vm76_vm3 = vcmp.lt.s32.totalorder %v54_v9, 4  ;;  %vm74_vm4 = vcmp.lt.s32.totalorder %v54_v9, 2 }
  0x20   :  { %v60_v29 = vor.u32 %v59_v23, %v58_v12  ;;  %v63_v30 = vor.u32 %v62_v24, %v61_v14  ;;  %v66_v31 = vor.u32 %v65_v25, %v64_v16  ;;  %v32_v9 = vmul.f32 0.5, %v166_v6 }
  0x21   :  { %v69_v32 = vor.u32 %v68_v26, %v67_v18  ;;  %v72_v33 = vor.u32 %v71_v28, %v70_v20 }
  0x22   :  { %v77_v34 = vsel %vm73_vm1, %v57_v22, %v60_v29  ;;  %v81_v35 = vsel %vm73_vm1, %v60_v29, %v63_v30  ;;  %v78_v37 = vsel %vm76_vm3, %v66_v31, 2102212464  ;;  %v85_v39 = vsel %vm73_vm1, %v63_v30, %v66_v31 }
  0x23   :  { %v82_v38 = vsel %vm76_vm3, %v69_v32, 920167782  ;;  %v86_v40 = vsel %vm76_vm3, %v72_v33, 1326507024  ;;  %v79_v41 = vsel %vm75_vm2, %v63_v30, %v78_v37  ;;  %187 = vtanh.f32 %v32_v9 }
  0x24   :  { %v83_v42 = vsel %vm75_vm2, %v66_v31, %v82_v38  ;;  %v87_v43 = vsel %vm75_vm2, %v69_v32, %v86_v40  ;;  %v80_v44 = vsel %vm74_vm4, %v77_v34, %v79_v41  ;;  %189 = vtanh.f32 %v25_v17 }
  0x25   :  { %v84_v45 = vsel %vm74_vm4, %v81_v35, %v83_v42  ;;  %v88_v46 = vsel %vm74_vm4, %v85_v39, %v87_v43  ;;  %v96_v51 = vmul.u32 %v89_v36, %v80_v44  ;;  %v27_v30 = vstv %s24_s19 }
  0x26   :  { %v243_v47 = vmul.u32.u64.low %v89_v36, %v88_v46  ;;  %v244_v48 = vmul.u32.u64.high %v89_v36, %v88_v46, %v243_v47  ;;  %v246_v49 = vmul.u32.u64.low %v89_v36, %v84_v45  ;;  %v247_v50 = vmul.u32.u64.high %v89_v36, %v84_v45, %v246_v49 }
  0x27   :  { %v36_v31 = vstv %s165_s20  ;;  %v150_v34 = vmul.f32 %v174_v4, %v174_v4  ;;  %v151_v36 = vstv %s173_s21  ;;  %v145_v41 = vstv %s167_s22 }
  0x28   :  { %vm98_vm5 = vc.u32 %v244_v48, %v246_v49  ;;  %v99_v52 = vadd.s32 1, %v247_v50  ;;  %v97_v63 = vadd.s32 %v246_v49, %v244_v48  ;;  %v157_v48 = vstv %s175_s25 }
  0x29   :  { %v152_v43 = vmul.f32 %v151_v36, %v150_v34 }
  0x2a   :  { %v100_v53 = vsel %vm98_vm5, %v99_v52, %v247_v50 }
  0x2b   :  { %v101_v54 = vadd.s32 %v100_v53, %v96_v51 }
  0x2d   :  { %v102_v55 = vadd.s32 536870912, %v101_v54  ;;  %v188_v23 = vpop.eup %187 }
  0x2e   :  { %v34_v25 = vadd.f32 1.0, %v188_v23  ;;  %v190_v27 = vpop.eup %189 }
  0x2f   :  { %v103_v56 = vshrl.u32 %v102_v55, 30  ;;  %v28_v37 = vmul.f32 %v190_v27, %v27_v30 }
  0x30   :  { %v35_v28 = vmul.f32 0.5, %v34_v25 }
  0x31   :  { %v104_v57 = vshll.u32 %v103_v56, 30  ;;  %v127_v15 = vsub.s32 4, %v103_v56 }
  0x32   :  { %v37_v38 = vmul.f32 %v36_v31, %v35_v28 }
  0x33   :  { %v105_v58 = vsub.s32 %v101_v54, %v104_v57  ;;  %v128_v19 = vsel %vm43_vm7, %v127_v15, %v103_v56 }
  0x34   :  { %v130_v22 = vsel %vm42_vm8, 0, %v128_v19  ;;  %v153_v46 = vmin.f32 %v28_v37, %v37_v38 }
  0x35   :  { %v107_v59 = vsub.s32 0, %v105_v58  ;;  %v134_v24 = vadd.s32 3, %v130_v22 }
  0x37   :  { %v170_v60 = vmin.u32 %v107_v59, %v105_v58  ;;  %v135_v26 = vand.u32 3, %v134_v24 }
  0x39   :  { %v109_v61 = vclz %v170_v60  ;;  %vm140_vm9 = vcmp.eq.s32.totalorder %v135_v26, 2  ;;  %vm137_vm10 = vcmp.eq.s32.totalorder %v135_v26, 0  ;;  %vm136_vm11 = vcmp.lt.s32.totalorder %v135_v26, 2 }
  0x3b   :  { %v171_v62 = vadd.s32 4294967294, %v109_v61 }
  0x3d   :  { %vm172_vm6 = vcmp.lt.s32.totalorder %v171_v62, 0 }
  0x3e   :  { %v112_v1 = vsel %vm172_vm6, 0, %v171_v62 }
  0x3f   :  { %v113_v2 = vsub.s32 32, %v112_v1  ;;  %v114_v3 = vshll.u32 %v105_v58, %v112_v1  ;;  %v117_v5 = vsub.s32 4294967266, %v112_v1 }
  0x41   :  { %v115_v7 = vshrl.u32 %v97_v63, %v113_v2  ;;  %v118_v8 = vadd.s32 127, %v117_v5 }
  0x43   :  { %v116_v10 = vor.u32 %v115_v7, %v114_v3  ;;  %v119_v11 = vshll.u32 %v118_v8, 23 }
  0x45   :  { %v120_v12 = vor.u32 4788187, %v119_v11  ;;  %v123_v13 = vcvt.s32.f32 %v116_v10 }
  0x47   :  { %v121_v14 = vand.u32 2147483647, %v120_v12 }
  0x49   :  { %v124_v16 = vmul.f32 %v123_v13, %v121_v14 }
  0x4b   :  { %v125_v18 = vxor.u32 2147483648, %v124_v16 }
  0x4d   :  { %v126_v20 = vsel %vm43_vm7, %v125_v18, %v124_v16 }
  0x4e   :  { %v129_v21 = vsel %vm42_vm8, %v237_v0, %v126_v20 }
  0x4f   :  { %191 = vcosq.f32 %v129_v21 }
  0x50   :  { %193 = vsinq.f32 %v129_v21 }
  0x59   :  { %v192_v29 = vpop.eup %191 }
  0x5a   :  { %v194_v32 = vpop.eup %193  ;;  %v141_v33 = vxor.u32 2147483648, %v192_v29 }
  0x5b   :  { %v138_v35 = vxor.u32 2147483648, %v194_v32 }
  0x5c   :  { %v142_v39 = vsel %vm140_vm9, %v141_v33, %v194_v32 }
  0x5d   :  { %v139_v40 = vsel %vm137_vm10, %v192_v29, %v138_v35 }
  0x5e   :  { %v143_v42 = vsel %vm136_vm11, %v139_v40, %v142_v39 }
  0x5f   :  { %v144_v44 = vsel %vm133_vm12, nan, %v143_v42 }
  0x60   :  { %v146_v45 = vmul.f32 %v145_v41, %v144_v44 }
  0x62   :  { %v154_v47 = vmin.f32 %v146_v45, %v152_v43 }
  0x64   :  { %v155_v49 = vmin.f32 %v153_v46, %v154_v47 }
  0x66   :  { %v158_v50 = vmul.f32 %v157_v48, %v155_v49 }
  0x68   :  { %159 = vst [vmem:[%s272_s2] sm:$0xff] %v158_v50 }
  0x69   :  { %164 = vsyncpa [#allocation3], 1 }

</bundles_post_ra>
